<compile_context>
chip_gen: v6e
topology: v6e:2x2x1
jax: 0.10.0
libtpu: 0.0.40
codegen_flags: <defaults>
</compile_context>

<pallas_src>
import math
import functools

import jax
import jax.numpy as jnp
from jax.experimental import pallas as pl
from jax.experimental.pallas import tpu as pltpu


def _expnormal_kernel(dist_ref, means_ref, betas_ref, out_ref, *,
                      cutoff_lower, cutoff_upper, alpha):
    d = dist_ref[...]          # [1, tile_e]       (edges on the lane axis)
    means = means_ref[...]     # [num_rbf, 1]      (rbf channels on sublanes)
    betas = betas_ref[...]     # [num_rbf, 1]

    # CosineCutoff(0, cutoff_upper): the module hardcodes lower=0 for the cutoff,
    # so this form is exact for any cutoff_lower passed to ExpNormalSmearing.
    cutoffs = 0.5 * (jnp.cos(d * (math.pi / cutoff_upper)) + 1.0)
    cutoffs = jnp.where(d < cutoff_upper, cutoffs, 0.0)           # [1, tile_e]

    # exp-normal radial basis (per-edge exp amortized over the rbf axis).
    expd = jnp.exp(alpha * (cutoff_lower - d))                    # [1, tile_e]
    diff = expd - means                                           # [num_rbf, tile_e]
    rbf = jnp.exp(-betas * diff * diff)                           # [num_rbf, tile_e]

    out_ref[...] = (cutoffs * rbf).astype(out_ref.dtype)


def _round_up(x, m):
    return ((x + m - 1) // m) * m


def _pick_tile_e(E, tile_e_req, num_rbf, out_bytes):
    """Pick the edge-axis tile (multiple of 128); prefer an even grid-step count."""
    n_chunks = pl.cdiv(E, 128)                 # 128-lane chunks of work
    if n_chunks <= 1:
        return 128
    # Requested chunks-per-tile, rounded up to whole 128-lane chunks.
    c_req = max(1, _round_up(max(int(tile_e_req), 128), 128) // 128)
    # VMEM guard: ~5 live f32 temps of [num_rbf, tile] + double-buffered output.
    bytes_per_chunk = num_rbf * 128 * (5 * 4 + 2 * out_bytes)
    c_max = max(1, (12 << 20) // bytes_per_chunk)
    c_req = min(c_req, c_max, n_chunks)
    # Prefer an even number of grid steps (>= 2) so the "parallel" axis splits
    # evenly across v7x's two TensorCores; search a small window around c_req.
    best_c, best_key = c_req, None
    lo = max(1, c_req // 2)
    hi = min(n_chunks, c_max, 2 * c_req)
    for c in range(lo, hi + 1):
        steps = pl.cdiv(n_chunks, c)
        key = (0 if steps % 2 == 0 else 1, abs(c - c_req))
        if best_key is None or key < best_key:
            best_key, best_c = key, c
    return best_c * 128


def exp_normal_smearing(dist, means, betas, *,
                        cutoff_lower=0.0, cutoff_upper=5.0,
                        tile_e=2048, out_dtype=jnp.float32, edge_major=False):
    """dist: [E]. means, betas: [num_rbf].

    Returns [num_rbf, E] (lane-dense, no transpose pass) by default, or
    [E, num_rbf] (PyTorch layout) if edge_major=True.
    """
    E = dist.shape[0]
    num_rbf = means.shape[0]
    alpha = 5.0 / (cutoff_upper - cutoff_lower)

    if E == 0:
        shape = (0, num_rbf) if edge_major else (num_rbf, 0)
        return jnp.zeros(shape, dtype=out_dtype)

    out_bytes = jnp.dtype(out_dtype).itemsize
    tile_e = _pick_tile_e(E, tile_e, num_rbf, out_bytes)
    grid = (pl.cdiv(E, tile_e),)

    dist_lane = dist.astype(jnp.float32).reshape(1, E)      # edges on the lane axis
    means2d = means.reshape(num_rbf, 1).astype(jnp.float32)
    betas2d = betas.reshape(num_rbf, 1).astype(jnp.float32)

    kernel = functools.partial(
        _expnormal_kernel,
        cutoff_lower=cutoff_lower,
        cutoff_upper=cutoff_upper,
        alpha=alpha,
    )

    out_t = pl.pallas_call(
        kernel,
        out_shape=jax.ShapeDtypeStruct((num_rbf, E), out_dtype),
        grid_spec=pl.GridSpec(
            grid=grid,
            in_specs=[
                pl.BlockSpec((1, tile_e), lambda i: (0, i)),        # dist tile
                pl.BlockSpec((num_rbf, 1), lambda i: (0, 0)),       # means (resident)
                pl.BlockSpec((num_rbf, 1), lambda i: (0, 0)),       # betas (resident)
            ],
            out_specs=pl.BlockSpec((num_rbf, tile_e), lambda i: (0, i)),
        ),
        compiler_params=pltpu.CompilerParams(
            dimension_semantics=("parallel",),
        ),
    )(dist_lane, means2d, betas2d)

    if edge_major:
        # Extra HBM pass; only use when the PyTorch layout is strictly required.
        return out_t.T
    return out_t


def _initial_params(cutoff_lower, cutoff_upper, num_rbf):
    # Matches ExpNormalSmearing._initial_params (deterministic).
    start_value = math.exp(-cutoff_upper + cutoff_lower)
    means = jnp.linspace(start_value, 1.0, num_rbf, dtype=jnp.float32)
    betas = jnp.full((num_rbf,),
                     (2.0 / num_rbf * (1.0 - start_value)) ** (-2),
                     dtype=jnp.float32)
    return means, betas


def _reference(dist, means, betas, cutoff_lower, cutoff_upper):
    alpha = 5.0 / (cutoff_upper - cutoff_lower)
    d = dist[:, None]
    cutoffs = 0.5 * (jnp.cos(d * math.pi / cutoff_upper) + 1.0)
    cutoffs = cutoffs * (d < cutoff_upper).astype(d.dtype)
    return cutoffs * jnp.exp(-betas[None, :] *
                             (jnp.exp(alpha * (cutoff_lower - d)) - means[None, :]) ** 2)


if __name__ == "__main__":
    cutoff_lower, cutoff_upper, num_rbf = 0.0, 5.0, 50
    E = 300  # deliberately not a multiple of 128 (exercises the ragged last block)

    key = jax.random.PRNGKey(0)
    # distances in [0, 6): some beyond the cutoff to exercise the mask.
    dist = jax.random.uniform(key, (E,), dtype=jnp.float32, minval=0.0, maxval=6.0)
    means, betas = _initial_params(cutoff_lower, cutoff_upper, num_rbf)
    ref = _reference(dist, means, betas, cutoff_lower, cutoff_upper)  # [E, num_rbf]

    # Default lane-dense layout [num_rbf, E]: no host-side transpose pass.
    out_rbf_major = exp_normal_smearing(dist, means, betas,
                                        cutoff_lower=cutoff_lower,
                                        cutoff_upper=cutoff_upper)
    out_rbf_major = jax.block_until_ready(out_rbf_major)
    assert out_rbf_major.shape == (num_rbf, E)
    assert jnp.allclose(out_rbf_major.T, ref, atol=1e-5, rtol=1e-5), "f32 mismatch"

    # PyTorch-layout output [E, num_rbf] for drop-in compatibility.
    out_edge_major = exp_normal_smearing(dist, means, betas,
                                         cutoff_lower=cutoff_lower,
                                         cutoff_upper=cutoff_upper,
                                         edge_major=True)
    out_edge_major = jax.block_until_ready(out_edge_major)
    assert out_edge_major.shape == (E, num_rbf)
    assert jnp.allclose(out_edge_major, ref, atol=1e-5, rtol=1e-5), "edge-major mismatch"

    # bf16 writeback (halves HBM store traffic; math stays f32 in the kernel).
    out_bf16 = exp_normal_smearing(dist, means, betas,
                                   cutoff_lower=cutoff_lower,
                                   cutoff_upper=cutoff_upper,
                                   out_dtype=jnp.bfloat16)
    out_bf16 = jax.block_until_ready(out_bf16)
    assert out_bf16.shape == (num_rbf, E)
    assert jnp.allclose(out_bf16.T.astype(jnp.float32), ref,
                        atol=1e-2, rtol=2e-2), "bf16 mismatch"

    print("KERNEL_OK")
</pallas_src>

<mosaic_0001>
module attributes {stable_mosaic.version = 11 : i64} {
  func.func @_expnormal_kernel(%arg0: i32, %arg1: memref<1x256xf32, #tpu.memory_space<vmem>>, %arg2: memref<50x1xf32, #tpu.memory_space<vmem>>, %arg3: memref<50x1xf32, #tpu.memory_space<vmem>>, %arg4: memref<50x256xf32, #tpu.memory_space<vmem>>) attributes {dimension_semantics = [#tpu.dimension_semantics<parallel>], iteration_bounds = array<i64: 2>, scalar_prefetch = 0 : i64, scratch_operands = 0 : i64, tpu.core_type = #tpu.core_type<tc>, window_params = [{transform_indices = @transform_0, window_bounds = array<i64: 1, 256>}, {pipeline_mode = #tpu.pipeline_mode<synchronous>, transform_indices = @transform_1, window_bounds = array<i64: 50, 1>}, {pipeline_mode = #tpu.pipeline_mode<synchronous>, transform_indices = @transform_2, window_bounds = array<i64: 50, 1>}, {transform_indices = @transform_3, window_bounds = array<i64: 50, 256>}]} {
    %c0 = arith.constant 0 : index
    %c0_0 = arith.constant 0 : index
    %0 = vector.load %arg1[%c0, %c0_0] : memref<1x256xf32, #tpu.memory_space<vmem>>, vector<1x256xf32>
    %c0_1 = arith.constant 0 : index
    %c0_2 = arith.constant 0 : index
    %1 = vector.load %arg2[%c0_1, %c0_2] : memref<50x1xf32, #tpu.memory_space<vmem>>, vector<50x1xf32>
    %c0_3 = arith.constant 0 : index
    %c0_4 = arith.constant 0 : index
    %2 = vector.load %arg3[%c0_3, %c0_4] : memref<50x1xf32, #tpu.memory_space<vmem>>, vector<50x1xf32>
    %cst = arith.constant 0.628318548 : f32
    %3 = vector.broadcast %cst : f32 to vector<1x256xf32>
    %4 = arith.mulf %0, %3 : vector<1x256xf32>
    %5 = math.cos %4 : vector<1x256xf32>
    %cst_5 = arith.constant 1.000000e+00 : f32
    %6 = vector.broadcast %cst_5 : f32 to vector<1x256xf32>
    %7 = arith.addf %5, %6 : vector<1x256xf32>
    %cst_6 = arith.constant 5.000000e-01 : f32
    %8 = vector.broadcast %cst_6 : f32 to vector<1x256xf32>
    %9 = arith.mulf %8, %7 : vector<1x256xf32>
    %cst_7 = arith.constant 5.000000e+00 : f32
    %10 = vector.broadcast %cst_7 : f32 to vector<1x256xf32>
    %11 = arith.cmpf olt, %0, %10 : vector<1x256xf32>
    %cst_8 = arith.constant 0.000000e+00 : f32
    %12 = vector.broadcast %cst_8 : f32 to vector<1x256xf32>
    %13 = arith.select %11, %9, %12 : vector<1x256xi1>, vector<1x256xf32>
    %cst_9 = arith.constant 0.000000e+00 : f32
    %14 = vector.broadcast %cst_9 : f32 to vector<1x256xf32>
    %15 = arith.subf %14, %0 : vector<1x256xf32>
    %cst_10 = arith.constant 1.000000e+00 : f32
    %16 = vector.broadcast %cst_10 : f32 to vector<1x256xf32>
    %17 = arith.mulf %16, %15 : vector<1x256xf32>
    %18 = math.exp %17 : vector<1x256xf32>
    %19 = vector.broadcast %18 : vector<1x256xf32> to vector<50x256xf32>
    %20 = vector.broadcast %1 : vector<50x1xf32> to vector<50x256xf32>
    %21 = arith.subf %19, %20 : vector<50x256xf32>
    %cst_11 = arith.constant 0.000000e+00 : f32
    %22 = vector.broadcast %cst_11 : f32 to vector<50x1xf32>
    %23 = arith.subf %22, %2 : vector<50x1xf32>
    %24 = vector.broadcast %23 : vector<50x1xf32> to vector<50x256xf32>
    %25 = arith.mulf %24, %21 : vector<50x256xf32>
    %26 = arith.mulf %25, %21 : vector<50x256xf32>
    %27 = math.exp %26 : vector<50x256xf32>
    %28 = vector.broadcast %13 : vector<1x256xf32> to vector<50x256xf32>
    %29 = arith.mulf %28, %27 : vector<50x256xf32>
    %c0_12 = arith.constant 0 : index
    %c0_13 = arith.constant 0 : index
    %30 = vector.load %arg4[%c0_12, %c0_13] : memref<50x256xf32, #tpu.memory_space<vmem>>, vector<50x256xf32>
    tpu.vector_store %arg4[%c0_12, %c0_13], %29 {strides = array<i32>} : memref<50x256xf32, #tpu.memory_space<vmem>>, vector<50x256xf32>,
    return
  }
  func.func @transform_0(%arg0: i32) -> (i32, i32) {
    %c0_i32 = arith.constant 0 : i32
    %c0_i32_0 = arith.constant 0 : i32
    return %c0_i32, %arg0 : i32, i32
  }
  func.func @transform_1(%arg0: i32) -> (i32, i32) {
    %c0_i32 = arith.constant 0 : i32
    %c0_i32_0 = arith.constant 0 : i32
    %c0_i32_1 = arith.constant 0 : i32
    return %c0_i32, %c0_i32_0 : i32, i32
  }
  func.func @transform_2(%arg0: i32) -> (i32, i32) {
    %c0_i32 = arith.constant 0 : i32
    %c0_i32_0 = arith.constant 0 : i32
    %c0_i32_1 = arith.constant 0 : i32
    return %c0_i32, %c0_i32_0 : i32, i32
  }
  func.func @transform_3(%arg0: i32) -> (i32, i32) {
    %c0_i32 = arith.constant 0 : i32
    %c0_i32_0 = arith.constant 0 : i32
    return %c0_i32, %arg0 : i32, i32
  }
}

</mosaic_0001>

<bundles_post_ra>
// kernel: tpu_custom_call.1
= control target key start
LH: loop header
LB: loop body
LE: loop exit
PB: predicated region body
PF: predicated region fallthrough
CT: control target
= control target key end

     0   :  { %8 = vsyncpa [#allocation3], 0  ;;  %s1021_s0 = inlined_call_operand.vmem [shape: f32[1,300], index: 0, kind: input, shape index: {}]   ;;  %s1022_s1 = inlined_call_operand.vmem [shape: f32[50,1], index: 1, kind: input, shape index: {}]   ;;  %s1023_s2 = inlined_call_operand.vmem [shape: f32[50,1], index: 2, kind: input, shape index: {}]   ;;  %s1024_s3 = inlined_call_operand.hbm [shape: f32[50,300], index: 3, kind: output, shape index: {}]  }
   0x1   :  { %10 = vsyncpa [#allocation3 + $0x1], 0  ;;  %s794_s12 = smov 0   ;;  %s796_s13 = smov 0  }
   0x2   :  { %s798_s14 = smov 0   ;;  %s800_s15 = smov 0  }
   0x3 LB: > { %s815_s16 = sadd.s32 4294967295, %s762_s15   ;;  %s596_s17 = sadd.s32 4294967294, %s762_s15   ;;  %s762_s15 = sphi %s800_s15, %s1030_s15   ;;  %s758_s14 = sphi %s798_s14, %s1029_s14   ;;  %s754_s13 = sphi %s796_s13, %s1028_s13   ;;  %s750_s12 = sphi %s794_s12, %s1027_s12  }
   0x4   : > { %s819_s18 = sadd.s32 1, %s762_s15   ;;  %s91_s19 = sadd.s32 1, %s758_s14 }
   0x5   : > { %s88_s20 = ssub.s32 %s762_s15, %s819_s18  ;;  %p101_p0 = scmp.ne.s32.totalorder %s758_s14, %s754_s13 }
   0x6   : > { %p89_p1 = scmp.eq.s32.totalorder %s88_s20, 0  ;;  %p102_p2 = scmp.eq.s32.totalorder %s815_s16, 1 }
   0x7   : > { %p107_p3 = scmp.ne.s32.totalorder %s754_s13, %s750_s12  ;;  %p108_p4 = scmp.eq.s32.totalorder %s596_s17, 1 }
   0x8   : > { %s830_s21 = scalar_select %p89_p1, %s758_s14, %s91_s19  }
   0x9   : > { %p832_p5 = por %p102_p2, %p101_p0  ;;  %p836_p6 = por %p108_p4, %p107_p3 }
   0xa   : > { %p599_p7 = scmp.ge.s32.totalorder %s762_s15, 1  ;;  %p148_p8 = scmp.lt.s32.totalorder %s762_s15, 3 }
   0xc   : > { %p149_p9 = pnand %p599_p7, %p148_p8 }
   0xd   : > { %s855_s5 = sshll.u32 (!%p149_p9), %s815_s16, 1  ;;  %s172_s19 = sand.u32 (!%p149_p9), 1, %s754_s13  }
   0xe   : > { %152 = sbr.rel (%p149_p9) target bundleno = 224 (0xe0), region = 32  ;;  %p180_p10 = scmp.lt.s32.totalorder (!%p149_p9), %s855_s5, 2 }
   0xf   : > { %s614_s20 = smul.u32 (!%p149_p9), 112, %s172_s19  ;;  %s955_s25 = scalar_lea.sflag (!%p149_p9), [#allocation3], %s172_s19 }
  0x11   : > { %s937_s24 = scalar_lea.vmem (!%p149_p9), [#allocation2], %s614_s20 }
  0x13   : > { %v196_v0 = vld [vmem:[%s1022_s1 + $0x10] sm:$0xff]  ;;  %v194_v1 = vld [vmem:[%s1022_s1] sm:$0xff]  ;;  %v764_v2 = vmov 0   ;;  %v197_v3 = vld [vmem:[%s1022_s1 + $0x18] sm:$0xff]  ;;  %s181_s17 = scalar_select %p180_p10, %s855_s5, 2 }
  0x14   : > { %667 = vset.pattern.permute.xlu1 %v764_v2  ;;  %666 = vset.pattern.permute.xlu0 %v764_v2  ;;  %v195_v4 = vld [vmem:[%s1022_s1 + $0x8] sm:$0xff]  ;;  %v198_v6 = vld [vmem:[%s1022_s1 + $0x20] sm:$0xff]  ;;  %v200_v9 = vld [vmem:[%s1022_s1 + $0x30] sm:$0x3]  ;;  %v765_v35 = vmov 683565275  }
  0x15   : > { %342 = vperm.xlu1 %667, %v196_v0   ;;  %332 = vperm.xlu0 %666, %v194_v1   ;;  %v199_v5 = vld [vmem:[%s1022_s1 + $0x28] sm:$0xff]  ;;  %v201_v7 = vld [vmem:[%s1023_s2] sm:$0xff]  ;;  %s182_s26 = scalar_lea.vmem %s1021_s0, %s181_s17  ;;  %v203_v10 = vld [vmem:[%s1023_s2 + $0x10] sm:$0xff]  ;;  %v766_v37 = vmov 2475754826  }
  0x16   : > { %v379_v8 = vsub.f32 0.0, %v201_v7  ;;  %v202_v11 = vld [vmem:[%s1023_s2 + $0x8] sm:$0xff]  ;;  %v880_v12 = vld [vmem:[%s182_s26] sm:$0x3]  ;;  %v381_v14 = vsub.f32 0.0, %v203_v10  ;;  %v204_v18 = vld [vmem:[%s1023_s2 + $0x18] sm:$0xff] }
  0x17   : > { %v883_v13 = vmul.f32 0.62831855, %v880_v12  ;;  %v380_v15 = vsub.f32 0.0, %v202_v11  ;;  %v205_v17 = vld [vmem:[%s1023_s2 + $0x20] sm:$0xff]  ;;  %v382_v22 = vsub.f32 0.0, %v204_v18  ;;  %v206_v25 = vld [vmem:[%s1023_s2 + $0x28] sm:$0xff] }
  0x18   : > { %v383_v21 = vsub.f32 0.0, %v205_v17  ;;  %v207_v24 = vld [vmem:[%s1023_s2 + $0x30] sm:$0x3]  ;;  %v384_v29 = vsub.f32 0.0, %v206_v25  ;;  %v767_v39 = vmov 2131351028  }
  0x19   : > { %347 = vperm.xlu1 %667, %v197_v3   ;;  %337 = vperm.xlu0 %666, %v195_v4   ;;  %v212_v16 = vand.u32 2139095040, %v883_v13  ;;  %v209_v20 = vand.u32 2147483647, %v883_v13  ;;  %v385_v28 = vsub.f32 0.0, %v207_v24  ;;  %v768_v41 = vmov 2102212464  }
  0x1a   : > { %v769_v43 = vmov 920167782   ;;  %v770_v50 = vmov 1326507024   ;;  %vm211_vm7 = vcmp.lt.s32.totalorder %v883_v13, 0  ;;  %vm301_vm12 = vweird.f32 %v883_v13  ;;  %s525_s26 = ssub.s32 (%p832_p5), 3, %s855_s5 }
  0x1b   : > { %v213_v19 = vshrl.u32 %v212_v16, 23  ;;  %v216_v27 = vand.u32 8388607, %v209_v20  ;;  %vm210_vm8 = vcmp.le.f32.partialorder %v209_v20, 0.7853982  ;;  %vm314_vm13 = vcmp.lt.f32.partialorder %v880_v12, 5.0 }
  0x1c   : > { %p526_p11 = scmp.lt.s32.totalorder (%p832_p5), %s525_s26, 2 }
  0x1d   : > { %357 = vperm.xlu1 %667, %v199_v5   ;;  %352 = vperm.xlu0 %666, %v198_v6   ;;  %v601_v23 = vadd.s32 4294967169, %v213_v19  ;;  %v217_v32 = vor.u32 8388608, %v216_v27 }
  0x1f   : > { %v219_v26 = vadd.s32 1, %v601_v23  ;;  %v257_v52 = vshll.u32 %v217_v32, 8 }
  0x21   : > { %388 = vperm.xlu1 %667, %v379_v8   ;;  %362 = vperm.xlu0 %666, %v200_v9   ;;  %vm220_vm0 = vcmp.gt.s32.totalorder %v219_v26, 0 }
  0x22   : > { %v221_v30 = vsel %vm220_vm0, %v219_v26, 0 }
  0x23   : > { %v223_v31 = vand.u32 31, %v221_v30  ;;  %v222_v33 = vshrl.u32 %v221_v30, 5 }
  0x25   : > { %398 = vperm.xlu1 %667, %v381_v14   ;;  %393 = vperm.xlu0 %666, %v380_v15   ;;  %v224_v34 = vsub.s32 32, %v223_v31  ;;  %v226_v36 = vshll.u32 %v765_v35, %v223_v31  ;;  %v229_v38 = vshll.u32 %v766_v37, %v223_v31  ;;  %v232_v40 = vshll.u32 %v767_v39, %v223_v31 }
  0x26   : > { %v235_v42 = vshll.u32 %v768_v41, %v223_v31  ;;  %v238_v44 = vshll.u32 %v769_v43, %v223_v31  ;;  %vm241_vm1 = vcmp.lt.s32.totalorder %v222_v33, 1  ;;  %vm244_vm2 = vcmp.lt.s32.totalorder %v222_v33, 4 }
  0x27   : > { %v225_v45 = vshrl.u32 %v765_v35, %v224_v34  ;;  %v227_v46 = vshrl.u32 %v766_v37, %v224_v34  ;;  %v230_v47 = vshrl.u32 %v767_v39, %v224_v34  ;;  %v233_v48 = vshrl.u32 %v768_v41, %v224_v34 }
  0x28   : > { %v236_v49 = vshrl.u32 %v769_v43, %v224_v34  ;;  %v239_v51 = vshrl.u32 %v770_v50, %v224_v34  ;;  %vm242_vm3 = vcmp.lt.s32.totalorder %v222_v33, 2  ;;  %vm243_vm4 = vcmp.lt.s32.totalorder %v222_v33, 3 }
  0x29   : > { %408 = vperm.xlu1 %667, %v383_v21   ;;  %403 = vperm.xlu0 %666, %v382_v22   ;;  %v228_v53 = vor.u32 %v227_v46, %v226_v36  ;;  %v231_v54 = vor.u32 %v230_v47, %v229_v38  ;;  %v234_v55 = vor.u32 %v233_v48, %v232_v40 }
  0x2a   : > { %v237_v56 = vor.u32 %v236_v49, %v235_v42  ;;  %v240_v57 = vor.u32 %v239_v51, %v238_v44 }
  0x2b   : > { %v245_v58 = vsel %vm241_vm1, %v225_v45, %v228_v53  ;;  %v246_v59 = vsel %vm244_vm2, %v234_v55, 2102212464  ;;  %v249_v60 = vsel %vm241_vm1, %v228_v53, %v231_v54  ;;  %v253_v61 = vsel %vm241_vm1, %v231_v54, %v234_v55 }
  0x2c   : > { %v247_v62 = vsel %vm243_vm4, %v231_v54, %v246_v59  ;;  %v250_v63 = vsel %vm244_vm2, %v237_v56, 920167782  ;;  %v254_v0 = vsel %vm244_vm2, %v240_v57, 1326507024  ;;  %v320_v57 = vlaneseq }
  0x2d   : > { %418 = vperm.xlu1 %667, %v385_v28   ;;  %413 = vperm.xlu0 %666, %v384_v29   ;;  %v251_v1 = vsel %vm243_vm4, %v234_v55, %v250_v63  ;;  %v255_v2 = vsel %vm243_vm4, %v237_v56, %v254_v0  ;;  %v248_v3 = vsel %vm242_vm3, %v245_v58, %v247_v62  ;;  %v316_v55 = vsub.f32 0.0, %v880_v12 }
  0x2e   : > { %v252_v4 = vsel %vm242_vm3, %v249_v60, %v251_v1  ;;  %v256_v5 = vsel %vm242_vm3, %v253_v61, %v255_v2  ;;  %v264_v10 = vmul.u32 %v257_v52, %v248_v3  ;;  %v921_v58 = vshrl.u32 %v320_v57, 7 }
  0x2f   : > { %v902_v6 = vmul.u32.u64.low %v257_v52, %v256_v5  ;;  %v903_v7 = vmul.u32.u64.high %v257_v52, %v256_v5, %v902_v6  ;;  %v905_v8 = vmul.u32.u64.low %v257_v52, %v252_v4  ;;  %v906_v9 = vmul.u32.u64.high %v257_v52, %v252_v4, %v905_v8 }
  0x30   : > { %v317_v56 = vmul.f32 1.442695, %v316_v55  ;;  %v326_v61 = vsub.s32 1, %v921_v58 }
  0x31   : > { %vm266_vm5 = vc.u32 %v903_v7, %v905_v8  ;;  %v267_v11 = vadd.s32 1, %v906_v9  ;;  %v265_v25 = vadd.s32 %v905_v8, %v903_v7 }
  0x33   : > { %v268_v14 = vsel %vm266_vm5, %v267_v11, %v906_v9 }
  0x34   : > { %v269_v15 = vadd.s32 %v268_v14, %v264_v10 }
  0x36   : > { %v270_v16 = vadd.s32 536870912, %v269_v15 }
  0x38   : > { %v271_v17 = vshrl.u32 %v270_v16, 30 }
  0x3a   : > { %v272_v18 = vshll.u32 %v271_v17, 30  ;;  %v295_v40 = vsub.s32 4, %v271_v17 }
  0x3c   : > { %v273_v19 = vsub.s32 %v269_v15, %v272_v18  ;;  %v296_v42 = vsel %vm211_vm7, %v295_v40, %v271_v17 }
  0x3d   : > { %v298_v43 = vsel %vm210_vm8, 0, %v296_v42 }
  0x3e   : > { %v275_v21 = vsub.s32 0, %v273_v19  ;;  %v302_v44 = vand.u32 3, %v298_v43 }
  0x40   : > { %v602_v22 = vmin.u32 %v275_v21, %v273_v19  ;;  %vm307_vm9 = vcmp.eq.s32.totalorder %v302_v44, 2  ;;  %vm304_vm10 = vcmp.eq.s32.totalorder %v302_v44, 0  ;;  %vm303_vm11 = vcmp.lt.s32.totalorder %v302_v44, 2 }
  0x42   : > { %v277_v23 = vclz %v602_v22 }
  0x44   : > { %v603_v24 = vadd.s32 4294967294, %v277_v23 }
  0x46   : > { %vm604_vm6 = vcmp.lt.s32.totalorder %v603_v24, 0 }
  0x47   : > { %v280_v26 = vsel %vm604_vm6, 0, %v603_v24 }
  0x48   : > { %v281_v27 = vsub.s32 32, %v280_v26  ;;  %v282_v28 = vshll.u32 %v273_v19, %v280_v26  ;;  %v285_v29 = vsub.s32 4294967266, %v280_v26 }
  0x4a   : > { %v283_v30 = vshrl.u32 %v265_v25, %v281_v27  ;;  %v286_v31 = vadd.s32 127, %v285_v29 }
  0x4c   : > { %v284_v32 = vor.u32 %v283_v30, %v282_v28  ;;  %v287_v33 = vshll.u32 %v286_v31, 23 }
  0x4e   : > { %v288_v34 = vor.u32 4788187, %v287_v33  ;;  %v291_v35 = vcvt.s32.f32 %v284_v32 }
  0x50   : > { %v289_v36 = vand.u32 2147483647, %v288_v34 }
  0x52   : > { %v292_v37 = vmul.f32 %v291_v35, %v289_v36 }
  0x54   : > { %v293_v38 = vxor.u32 2147483648, %v292_v37 }
  0x56   : > { %v294_v39 = vsel %vm211_vm7, %v293_v38, %v292_v37 }
  0x57   : > { %v297_v41 = vsel %vm210_vm8, %v883_v13, %v294_v39  ;;  %v322_v13 = vsub.s32 0, %v921_v58 }
  0x58   : > { %668 = vcosq.f32 %v297_v41 }
  0x59   : > { %670 = vsinq.f32 %v297_v41 }
  0x5a   : > { %672 = vpow2.f32 %v317_v56 }
  0x65   : > { %v669_v45 = vpop.eup %668 }
  0x66   : > { %v671_v46 = vpop.eup %670  ;;  %v308_v47 = vxor.u32 2147483648, %v669_v45 }
  0x67   : > { %v305_v48 = vxor.u32 2147483648, %v671_v46  ;;  %v673_v62 = vpop.eup %672 }
  0x68   : > { %v309_v20 = vsel %vm307_vm9, %v308_v47, %v671_v46  ;;  %v323_v1 = vrot.slane %v673_v62, %v322_v13  ;;  %v327_v12 = vrot.slane %v673_v62, %v326_v61 }
  0x69   : > { %v306_v49 = vsel %vm304_vm10, %v669_v45, %v305_v48 }
  0x6a   : > { %v310_v50 = vsel %vm303_vm11, %v306_v49, %v309_v20 }
  0x6b   : > { %v311_v51 = vsel %vm301_vm12, nan, %v310_v50 }
  0x6c   : > { %v312_v52 = vadd.f32 1.0, %v311_v51 }
  0x6e   : > { %v313_v53 = vmul.f32 0.5, %v312_v52 }
  0x70   : > { %v918_v54 = vsel %vm314_vm13, %v313_v53, 0.0 }
  0x90   : > { %v343_v59 = vpop.permute.xlu1 %342  ;;  %v333_v60 = vpop.permute.xlu0 %332 }
  0x91   : > { %v365_v4 = vsub.f32 %v323_v1, %v333_v60  ;;  %v366_v5 = vsub.f32 %v327_v12, %v333_v60  ;;  %v369_v10 = vsub.f32 %v323_v1, %v343_v59  ;;  %v370_v11 = vsub.f32 %v327_v12, %v343_v59 }
  0x94   : > { %v348_v63 = vpop.permute.xlu1 %347  ;;  %v338_v0 = vpop.permute.xlu0 %337 }
  0x95   : > { %v371_v16 = vsub.f32 %v323_v1, %v348_v63  ;;  %v372_v17 = vsub.f32 %v327_v12, %v348_v63  ;;  %v367_v18 = vsub.f32 %v323_v1, %v338_v0  ;;  %v368_v19 = vsub.f32 %v327_v12, %v338_v0 }
  0x98   : > { %v358_v2 = vpop.permute.xlu1 %357  ;;  %v353_v3 = vpop.permute.xlu0 %352 }
  0x99   : > { %v375_v27 = vsub.f32 %v323_v1, %v358_v2  ;;  %v373_v28 = vsub.f32 %v323_v1, %v353_v3  ;;  %v374_v31 = vsub.f32 %v327_v12, %v353_v3  ;;  %v376_v34 = vsub.f32 %v327_v12, %v358_v2 }
  0x9c   : > { %v389_v6 = vpop.permute.xlu1 %388  ;;  %v363_v7 = vpop.permute.xlu0 %362 }
  0x9d   : > { %v421_v8 = vmul.f32 %v389_v6, %v365_v4  ;;  %v422_v9 = vmul.f32 %v389_v6, %v366_v5  ;;  %v377_v47 = vsub.f32 %v323_v1, %v363_v7  ;;  %v378_v49 = vsub.f32 %v327_v12, %v363_v7 }
  0x9e   : > { %v481_v12 = vrot.slane %v918_v54, %v322_v13  ;;  %v485_v6 = vrot.slane %v918_v54, %v326_v61 }
  0x9f   : > { %v435_v14 = vmul.f32 %v421_v8, %v365_v4  ;;  %v436_v15 = vmul.f32 %v422_v9, %v366_v5 }
  0xa0   : > { %v399_v21 = vpop.permute.xlu1 %398  ;;  %v394_v22 = vpop.permute.xlu0 %393 }
  0xa1   : > { %v449_v23 = vmul.f32 1.442695, %v435_v14  ;;  %v451_v24 = vmul.f32 1.442695, %v436_v15  ;;  %v425_v25 = vmul.f32 %v399_v21, %v369_v10  ;;  %v426_v26 = vmul.f32 %v399_v21, %v370_v11 }
  0xa2   : > { %v423_v29 = vmul.f32 %v394_v22, %v367_v18  ;;  %v424_v30 = vmul.f32 %v394_v22, %v368_v19 }
  0xa3   : > { %674 = vpow2.f32 %v449_v23  ;;  %v439_v32 = vmul.f32 %v425_v25, %v369_v10  ;;  %v440_v33 = vmul.f32 %v426_v26, %v370_v11 }
  0xa4   : > { %676 = vpow2.f32 %v451_v24  ;;  %v437_v35 = vmul.f32 %v423_v29, %v367_v18  ;;  %v438_v36 = vmul.f32 %v424_v30, %v368_v19  ;;  %v409_v37 = vpop.permute.xlu1 %408  ;;  %v404_v38 = vpop.permute.xlu0 %403 }
  0xa5   : > { %v457_v39 = vmul.f32 1.442695, %v439_v32  ;;  %v459_v40 = vmul.f32 1.442695, %v440_v33  ;;  %v429_v41 = vmul.f32 %v409_v37, %v373_v28  ;;  %v430_v42 = vmul.f32 %v409_v37, %v374_v31 }
  0xa6   : > { %v453_v43 = vmul.f32 1.442695, %v437_v35  ;;  %v455_v44 = vmul.f32 1.442695, %v438_v36  ;;  %v427_v45 = vmul.f32 %v404_v38, %v371_v16  ;;  %v428_v46 = vmul.f32 %v404_v38, %v372_v17 }
  0xa7   : > { %678 = vpow2.f32 %v457_v39  ;;  %v443_v48 = vmul.f32 %v429_v41, %v373_v28  ;;  %v444_v20 = vmul.f32 %v430_v42, %v374_v31 }
  0xa8   : > { %680 = vpow2.f32 %v459_v40  ;;  %v441_v50 = vmul.f32 %v427_v45, %v371_v16  ;;  %v442_v51 = vmul.f32 %v428_v46, %v372_v17  ;;  %v419_v52 = vpop.permute.xlu1 %418  ;;  %v414_v53 = vpop.permute.xlu0 %413 }
  0xa9   : > { %682 = vpow2.f32 %v453_v43  ;;  %v465_v55 = vmul.f32 1.442695, %v443_v48  ;;  %v467_v56 = vmul.f32 1.442695, %v444_v20  ;;  %v433_v57 = vmul.f32 %v419_v52, %v377_v47 }
  0xaa   : > { %684 = vpow2.f32 %v455_v44  ;;  %v461_v59 = vmul.f32 1.442695, %v441_v50  ;;  %v463_v60 = vmul.f32 1.442695, %v442_v51  ;;  %v434_v62 = vmul.f32 %v419_v52, %v378_v49 }
  0xab   : > { %686 = vpow2.f32 %v465_v55  ;;  %v447_v63 = vmul.f32 %v433_v57, %v377_v47  ;;  %v431_v0 = vmul.f32 %v414_v53, %v375_v27  ;;  %v432_v1 = vmul.f32 %v414_v53, %v376_v34 }
  0xac   : > { %688 = vpow2.f32 %v467_v56  ;;  %v448_v2 = vmul.f32 %v434_v62, %v378_v49 }
  0xad   : > { %690 = vpow2.f32 %v461_v59  ;;  %v473_v3 = vmul.f32 1.442695, %v447_v63  ;;  %v445_v4 = vmul.f32 %v431_v0, %v375_v27  ;;  %v446_v5 = vmul.f32 %v432_v1, %v376_v34 }
  0xae   : > { %692 = vpow2.f32 %v463_v60  ;;  %v475_v7 = vmul.f32 1.442695, %v448_v2 }
  0xaf   : > { %694 = vpow2.f32 %v473_v3  ;;  %v469_v8 = vmul.f32 1.442695, %v445_v4  ;;  %v471_v9 = vmul.f32 1.442695, %v446_v5 }
  0xb0   : > { %v675_v10 = vpop.eup %674  ;;  %696 = vpow2.f32 %v475_v7 }
  0xb1   : > { %v677_v13 = vpop.eup %676  ;;  %v488_v11 = vmul.f32 %v675_v10, %v481_v12  ;;  %698 = vpow2.f32 %v469_v8 }
  0xb2   : > { %v489_v14 = vmul.f32 %v677_v13, %v485_v6  ;;  %700 = vpow2.f32 %v471_v9 }
  0xb3   : > { %502 = vst [vmem:[%s937_s24] sm:$0xff] %v488_v11 }
  0xb4   : > { %v679_v54 = vpop.eup %678  ;;  %503 = vst [vmem:[%s937_s24 + $0x8] sm:$0xff] %v489_v14 }
  0xb5   : > { %v681_v58 = vpop.eup %680  ;;  %v492_v61 = vmul.f32 %v679_v54, %v481_v12 }
  0xb6   : > { %v683_v15 = vpop.eup %682  ;;  %v493_v16 = vmul.f32 %v681_v58, %v485_v6 }
  0xb7   : > { %v685_v17 = vpop.eup %684  ;;  %506 = vst [vmem:[%s937_s24 + $0x20] sm:$0xff] %v492_v61  ;;  %v490_v18 = vmul.f32 %v683_v15, %v481_v12 }
  0xb8   : > { %v687_v19 = vpop.eup %686  ;;  %507 = vst [vmem:[%s937_s24 + $0x28] sm:$0xff] %v493_v16  ;;  %v491_v21 = vmul.f32 %v685_v17, %v485_v6 }
  0xb9   : > { %v689_v22 = vpop.eup %688  ;;  %504 = vst [vmem:[%s937_s24 + $0x10] sm:$0xff] %v490_v18  ;;  %v496_v23 = vmul.f32 %v687_v19, %v481_v12 }
  0xba   : > { %v691_v24 = vpop.eup %690  ;;  %505 = vst [vmem:[%s937_s24 + $0x18] sm:$0xff] %v491_v21  ;;  %v497_v25 = vmul.f32 %v689_v22, %v485_v6 }
  0xbb   : > { %v693_v26 = vpop.eup %692  ;;  %510 = vst [vmem:[%s937_s24 + $0x40] sm:$0xff] %v496_v23  ;;  %v494_v27 = vmul.f32 %v691_v24, %v481_v12 }
  0xbc   : > { %v695_v28 = vpop.eup %694  ;;  %511 = vst [vmem:[%s937_s24 + $0x48] sm:$0xff] %v497_v25  ;;  %v495_v29 = vmul.f32 %v693_v26, %v485_v6 }
  0xbd   : > { %v697_v30 = vpop.eup %696  ;;  %508 = vst [vmem:[%s937_s24 + $0x30] sm:$0xff] %v494_v27  ;;  %v500_v31 = vmul.f32 %v695_v28, %v481_v12 }
  0xbe   : > { %v699_v32 = vpop.eup %698  ;;  %509 = vst [vmem:[%s937_s24 + $0x38] sm:$0xff] %v495_v29  ;;  %v501_v33 = vmul.f32 %v697_v30, %v485_v6  ;;  %523 = sbr.rel (!%p832_p5) target bundleno = 224 (0xe0), region = 36 }
  0xbf   : > { %v701_v34 = vpop.eup %700  ;;  %514 = vst [vmem:[%s937_s24 + $0x60] sm:$0x3] %v500_v31  ;;  %v498_v35 = vmul.f32 %v699_v32, %v481_v12 }
  0xc0   : > { %515 = vst [vmem:[%s937_s24 + $0x68] sm:$0x3] %v501_v33  ;;  %v499_v36 = vmul.f32 %v701_v34, %v485_v6 }
  0xc1   : > { %512 = vst [vmem:[%s937_s24 + $0x50] sm:$0xff] %v498_v35 }
  0xc2   : > { %513 = vst [vmem:[%s937_s24 + $0x58] sm:$0xff] %v499_v36 }
  0xc3   : > { %s1032_s26 = smov (!%p526_p11, %s525_s26), 2 }
  0xc4   : > { %s963_s27 = smul.u32 896, %s1032_s26 }
  0xc6   : > { %s530_s28 = ssub.s32 1792, %s963_s27 }
  0xc7   : > { %531 = vsyncadd %s955_s25, %s530_s28  ;;  %p606_p12 = scmp.ne.s32.totalorder %s963_s27, 0  ;;  %s613_s22 = sshll.u32 %s815_s16, 8 }
  0xc8   : > { %s972_s5 = scalar_lea.hbm %s1024_s3, %s613_s22  ;;  %s608_s4 = sshll.u32 %s1032_s26, 3 }
  0xc9   : > { %s537_s6 = sshll.u32 %s937_s24, 4  ;;  %s771_s8 = smov [#allocation2]   ;;  %s976_s6 = int_to_ptr.vmem [resolvable:$true] %s537_s6 }
  0xca   : > { %s702_s7 = scalar_lea.vmem %s976_s6, %s963_s27  ;;  %s706_s9 = sshll.u32 %s771_s8, 4  ;;  %s707_s9 = int_to_ptr.vmem [resolvable:$false] %s706_s9 }
  0xcb   : > { %p703_p13 = scmp.ne.s32.totalorder %s976_s6, %s702_s7  ;;  %s708_s16 = scalar_lea.vmem %s707_s9, 3584 }
  0xcc   : > { %p709_p2 = scmp.lt.s32.totalorder %s976_s6, %s707_s9  ;;  %p710_p3 = scmp.lt.s32.totalorder %s708_s16, %s702_s7 }
  0xcd   : > { %p704_p0 = pnand %p703_p13, %p606_p12 }
  0xce   : > { %p711_p4 = por %p710_p3, %p709_p2 }
  0xcf   : > { %p705_p1 = pneg %p704_p0 }
  0xd1   : > { %p712_p5 = pnand %p711_p4, %p705_p1 }
  0xd3   : > { %715 = shalt.err (!%p712_p5)
}
  0xd4   : > { %s716_s10 = scalar_lea.hbm %s972_s5, %s963_s27  ;;  %s720_s19 = scalar_lea.hbm %s1024_s3, 2688 }
  0xd5   : > { %p717_p7 = scmp.ne.s32.totalorder %s972_s5, %s716_s10  ;;  %p721_p10 = scmp.lt.s32.totalorder %s972_s5, %s1024_s3 }
  0xd6   : > { %p722_p11 = scmp.lt.s32.totalorder %s720_s19, %s716_s10 }
  0xd7   : > { %p718_p8 = pnand %p717_p7, %p606_p12 }
  0xd8   : > { %p723_p13 = por %p722_p11, %p721_p10 }
  0xd9   : > { %p719_p9 = pneg %p718_p8 }
  0xdb   : > { %p724_p0 = pnand %p723_p13, %p719_p9 }
  0xdd   : > { %727 = shalt.err (!%p724_p0)
}
  0xde   : > { %s772_s28 = smov 256   ;;  %s773_s22 = smov 384  }
  0xdf   : > { %543 = dma.vmem_to_hbm [thread:$0]  (%p606_p12), %s976_s6, %s963_s27, %s972_s5, %s955_s25, %s772_s28, %s773_s22, %s608_s4  }
  0xe0 PF: > { %p624_p1 = scmp.ge.s32.totalorder %s762_s15, 2  ;;  %s552_s29 = sand.u32 1, %s750_s12  }
  0xe1   : > { %s553_s30 = scalar_lea.sflag [#allocation3], %s552_s29 }
  0xe2   : > { %p621_p2 = pnand %p624_p1, %p836_p6 }
  0xe4   : > { %p622_p3 = pneg %p621_p2 }
  0xe6   : > { %745 = dma.done.wait (%p622_p3), %s553_s30, 1792  }
  0xe7   : > { %747 = vsyncadd (%p622_p3), %s553_s30, 4294965504  ;;  %p13_p4 = scmp.ge.s32.totalorder %s819_s18, 4   ;;  %s1027_s12 = smov %s754_s13 }
  0xe8   : > { %s1028_s13 = smov %s758_s14  ;;  %s1029_s14 = smov %s830_s21 }
  0xe9   : > { %s1030_s15 = smov %s819_s18  ;;  %15 = sbr.rel (!%p13_p4) target bundleno = 3 (0x3), region = 67 }
  0xee   :  { %558 = vsyncpa [#allocation3], 1 }
  0xef   :  { %560 = vsyncpa [#allocation3 + $0x1], 1 }

</bundles_post_ra>
